<compile_context>
chip_gen: v7x
topology: tpu7x:2x2x1
jax: 0.10.0
libtpu: 0.0.40
codegen_flags: <defaults>
</compile_context>

<pallas_src>
import functools

import jax
import jax.numpy as jnp
from jax.experimental import pallas as pl
from jax.experimental.pallas import tpu as pltpu


def _round_up(n, m):
    return (n + m - 1) // m * m


def _layernorm_kernel(x_ref, o_ref, *, mu_p, sig_p, eps, h_real):
    # x_ref: (tr, Hp) tile; columns >= h_real are zero padding, so the fused
    # sums are exact as long as we normalize by the real feature count.
    x = x_ref[...].astype(jnp.float32)
    s1 = jnp.sum(x, axis=-1, keepdims=True)          # (tr, 1)
    s2 = jnp.sum(x * x, axis=-1, keepdims=True)      # (tr, 1)
    inv_h = 1.0 / float(h_real)
    mean = s1 * inv_h
    var = jnp.maximum(s2 * inv_h - mean * mean, 0.0)
    # NOTE: matches the PyTorch module exactly: eps added to the std, not var.
    sigma = jnp.sqrt(var) + eps
    # Per-row reciprocal on the tiny (tr,1) result; fold the constant gain in.
    scale = pl.reciprocal(sigma) * sig_p             # exact reciprocal
    out = (x - mean) * scale + mu_p
    o_ref[...] = out.astype(o_ref.dtype)


def layer_norm(x, musig=(0.0, 1.0), *, eps=1e-4):
    """LayerNorm over the last axis with scalar (mu, sig) affine constants."""
    mu_p, sig_p = float(musig[0]), float(musig[1])
    orig_shape = x.shape
    H = orig_shape[-1]
    x2d = x.reshape(-1, H)
    R = x2d.shape[0]

    # Lane-dense feature axis: pad H up to a multiple of 128 lanes.
    Hp = _round_up(H, 128)

    # Row tile: largest multiple of 8 such that the 4 pipeline buffers
    # (in + out, double-buffered) fit a conservative f32 VMEM budget that is
    # safe on v7x (64 MiB physical) as well as v5e/v6e (128 MiB).
    pipeline_budget = 16 * 1024 * 1024        # bytes for the 4 DMA buffers
    bytes_per_row_f32 = Hp * 4                # budget at f32 even for bf16 in
    max_tr = max(8, (pipeline_budget // (4 * bytes_per_row_f32)) // 8 * 8)
    max_tr = min(max_tr, 2048)                # keep >=2 grid steps at scale
    tr = min(max_tr, _round_up(R, 8))
    Rp = _round_up(R, tr)

    pad_r, pad_h = Rp - R, Hp - H
    if pad_r or pad_h:
        x2d = jnp.pad(x2d, ((0, pad_r), (0, pad_h)))

    kernel = functools.partial(
        _layernorm_kernel, mu_p=mu_p, sig_p=sig_p, eps=eps, h_real=H
    )

    out_padded = pl.pallas_call(
        kernel,
        out_shape=jax.ShapeDtypeStruct((Rp, Hp), x.dtype),
        grid_spec=pltpu.PrefetchScalarGridSpec(
            num_scalar_prefetch=0,
            grid=(Rp // tr,),
            in_specs=[pl.BlockSpec((tr, Hp), lambda i: (i, 0))],
            out_specs=pl.BlockSpec((tr, Hp), lambda i: (i, 0)),
        ),
        compiler_params=pltpu.CompilerParams(
            dimension_semantics=("parallel",),      # 2-TC sharding on v7x
            vmem_limit_bytes=48 * 1024 * 1024,      # explicit, safe on v7x
        ),
    )(x2d)

    return out_padded[:R, :H].reshape(orig_shape)


def _layer_norm_ref(x, musig=(0.0, 1.0), eps=1e-4):
    mu_p, sig_p = musig
    xf = x.astype(jnp.float32)
    mean = jnp.mean(xf, axis=-1, keepdims=True)
    std = jnp.sqrt(jnp.mean((xf - mean) ** 2, axis=-1, keepdims=True)) + eps
    return ((xf - mean) / std * sig_p + mu_p).astype(x.dtype)


if __name__ == "__main__":
    key = jax.random.PRNGKey(0)
    batch, seq, hidden = 2, 8, 32
    x = jax.random.normal(key, (batch, seq, hidden), dtype=jnp.float32)

    # Deterministic "parameters" from the module's __init__: musig = (mu, sig)
    musig = (0.1, 1.5)

    out = layer_norm(x, musig)
    out = jax.block_until_ready(out)

    ref = _layer_norm_ref(x, musig)
    assert out.shape == x.shape and out.dtype == x.dtype
    assert jnp.allclose(out, ref, atol=1e-5, rtol=1e-5)

    print("KERNEL_OK")
</pallas_src>

<mosaic_0001>
module attributes {stable_mosaic.version = 11 : i64} {
  func.func @_layernorm_kernel(%arg0: i32, %arg1: memref<16x128xf32, #tpu.memory_space<vmem>>, %arg2: memref<16x128xf32, #tpu.memory_space<vmem>>) attributes {dimension_semantics = [#tpu.dimension_semantics<parallel>], iteration_bounds = array<i64: 1>, scalar_prefetch = 0 : i64, scratch_operands = 0 : i64, tpu.core_type = #tpu.core_type<tc>, window_params = [{transform_indices = @transform_0, window_bounds = array<i64: 16, 128>}, {transform_indices = @transform_1, window_bounds = array<i64: 16, 128>}]} {
    %c0 = arith.constant 0 : index
    %c0_0 = arith.constant 0 : index
    %0 = vector.load %arg1[%c0, %c0_0] : memref<16x128xf32, #tpu.memory_space<vmem>>, vector<16x128xf32>
    %cst = arith.constant dense<0.000000e+00> : vector<16xf32>
    %1 = vector.multi_reduction <add>, %0, %cst [1] : vector<16x128xf32> to vector<16xf32>
    %2 = vector.shape_cast %1 : vector<16xf32> to vector<16x1xf32>
    %3 = arith.mulf %0, %0 : vector<16x128xf32>
    %cst_1 = arith.constant dense<0.000000e+00> : vector<16xf32>
    %4 = vector.multi_reduction <add>, %3, %cst_1 [1] : vector<16x128xf32> to vector<16xf32>
    %5 = vector.shape_cast %4 : vector<16xf32> to vector<16x1xf32>
    %cst_2 = arith.constant 3.125000e-02 : f32
    %6 = vector.broadcast %cst_2 : f32 to vector<16x1xf32>
    %7 = arith.mulf %2, %6 : vector<16x1xf32>
    %cst_3 = arith.constant 3.125000e-02 : f32
    %8 = vector.broadcast %cst_3 : f32 to vector<16x1xf32>
    %9 = arith.mulf %5, %8 : vector<16x1xf32>
    %10 = arith.mulf %7, %7 : vector<16x1xf32>
    %11 = arith.subf %9, %10 : vector<16x1xf32>
    %cst_4 = arith.constant 0.000000e+00 : f32
    %12 = vector.broadcast %cst_4 : f32 to vector<16x1xf32>
    %13 = arith.maximumf %11, %12 : vector<16x1xf32>
    %14 = math.sqrt %13 : vector<16x1xf32>
    %cst_5 = arith.constant 9.99999974E-5 : f32
    %15 = vector.broadcast %cst_5 : f32 to vector<16x1xf32>
    %16 = arith.addf %14, %15 : vector<16x1xf32>
    %17 = tpu.reciprocal %16 : vector<16x1xf32> -> vector<16x1xf32>
    %cst_6 = arith.constant 1.500000e+00 : f32
    %18 = vector.broadcast %cst_6 : f32 to vector<16x1xf32>
    %19 = arith.mulf %17, %18 : vector<16x1xf32>
    %20 = vector.broadcast %7 : vector<16x1xf32> to vector<16x128xf32>
    %21 = arith.subf %0, %20 : vector<16x128xf32>
    %22 = vector.broadcast %19 : vector<16x1xf32> to vector<16x128xf32>
    %23 = arith.mulf %21, %22 : vector<16x128xf32>
    %cst_7 = arith.constant 1.000000e-01 : f32
    %24 = vector.broadcast %cst_7 : f32 to vector<16x128xf32>
    %25 = arith.addf %23, %24 : vector<16x128xf32>
    %c0_8 = arith.constant 0 : index
    %c0_9 = arith.constant 0 : index
    %26 = vector.load %arg2[%c0_8, %c0_9] : memref<16x128xf32, #tpu.memory_space<vmem>>, vector<16x128xf32>
    tpu.vector_store %arg2[%c0_8, %c0_9], %25 {strides = array<i32>} : memref<16x128xf32, #tpu.memory_space<vmem>>, vector<16x128xf32>,
    return
  }
  func.func @transform_0(%arg0: i32) -> (i32, i32) {
    %c0_i32 = arith.constant 0 : i32
    %c0_i32_0 = arith.constant 0 : i32
    return %arg0, %c0_i32 : i32, i32
  }
  func.func @transform_1(%arg0: i32) -> (i32, i32) {
    %c0_i32 = arith.constant 0 : i32
    %c0_i32_0 = arith.constant 0 : i32
    return %arg0, %c0_i32 : i32, i32
  }
}

</mosaic_0001>

<bundles_post_ra>
// kernel: tpu_custom_call.1
= control target key start
LH: loop header
LB: loop body
LE: loop exit
PB: predicated region body
PF: predicated region fallthrough
CT: control target
= control target key end

     0   :  { %6 = vsyncpa [#allocation3], 0  ;;  %s194_s0 = inlined_call_operand.hbm [shape: f32[16,128], index: 0, kind: input, shape index: {}]   ;;  %s195_s1 = inlined_call_operand.hbm [shape: f32[16,128], index: 1, kind: output, shape index: {}]  }
   0x1   :  { %7 = vsyncpa [#allocation4], 0  ;;  %s150_s6 = smov [#allocation2]   ;;  %s102_s10 = scalar_lea.hbm %s194_s0, 256 }
   0x2   :  { %s13_s7 = sshll.u32 %s150_s6, 4  ;;  %p103_p0 = scmp.ne.s32.totalorder %s194_s0, %s102_s10  ;;  %s14_s7 = int_to_ptr.vmem [resolvable:$true] %s13_s7 }
   0x3   :  { %p106_p1 = scmp.lt.u32.totalorder %s102_s10, %s194_s0 }
   0x5   :  { %p108_p2 = pnand %p106_p1, %p103_p0 }
   0x7   :  { %111 = shalt.err (!%p108_p2)
}
   0x8   :  { %s112_s15 = scalar_lea.vmem %s14_s7, 256  ;;  %p117_p4 = scmp.lt.s32.totalorder %s14_s7, %s14_s7 }
   0x9   :  { %p113_p3 = scmp.ne.s32.totalorder %s14_s7, %s112_s15  ;;  %p118_p5 = scmp.lt.s32.totalorder %s112_s15, %s112_s15 }
   0xb   :  { %p119_p6 = por %p118_p5, %p117_p4 }
   0xd   :  { %p120_p7 = pnand %p119_p6, %p113_p3 }
   0xf   :  { %123 = shalt.err (!%p120_p7)
}
  0x10   :  { %s151_s16 = smov 128   ;;  %s152_s17 = smov 8  }
  0x11   :  { %19 = dma.hbm_to_vmem [thread:$0]  %s194_s0, 256, %s14_s7, [#allocation3], %s151_s16, %s151_s16, %s152_s17  }
  0x12   :  { %146 = dma.done.wait [#allocation3], 256  }
  0x13   :  { %147 = vsyncadd [#allocation3], 4294967040  ;;  %v23_v0 = vld [vmem:[#allocation2] sm:$0xff]  ;;  %v24_v1 = vld [vmem:[#allocation2 + $0x8] sm:$0xff]  ;;  %s153_s0 = smov [#allocation5]  }
  0x14   :  { %25 = vadd.xlane.f32.xlu0 %v23_v0  ;;  %v29_v2 = vmul.f32 %v23_v0, %v23_v0  ;;  %v30_v3 = vmul.f32 %v24_v1, %v24_v1  ;;  %s78_s20 = sshll.u32 %s153_s0, 4  ;;  %s79_s20 = int_to_ptr.vmem [resolvable:$true] %s78_s20 }
  0x15   :  { %s124_s21 = scalar_lea.vmem %s79_s20, 256  ;;  %p129_p9 = scmp.lt.s32.totalorder %s79_s20, %s79_s20 }
  0x16   :  { %31 = vadd.xlane.f32.xlu1 %v29_v2  ;;  %p125_p8 = scmp.ne.s32.totalorder %s79_s20, %s124_s21  ;;  %p130_p10 = scmp.lt.s32.totalorder %s124_s21, %s124_s21 }
  0x18   :  { %27 = vadd.xlane.f32.xlu0 %v24_v1  ;;  %p131_p11 = por %p130_p10, %p129_p9 }
  0x1a   :  { %33 = vadd.xlane.f32.xlu1 %v30_v3  ;;  %p132_p12 = pnand %p131_p11, %p125_p8 }
  0xa1   :  { %v26_v4 = vpop.xlane.xlu0 %25 }
  0xa2   :  { %v35_v5 = vmul.f32 0.03125, %v26_v4 }
  0xa3   :  { %v32_v6 = vpop.xlane.xlu1 %31 }
  0xa4   :  { %v39_v7 = vmul.f32 %v35_v5, %v35_v5  ;;  %v37_v8 = vmul.f32 0.03125, %v32_v6  ;;  %v65_v31 = vsub.f32 %v23_v0, %v35_v5 }
  0xa5   :  { %v28_v9 = vpop.xlane.xlu0 %27 }
  0xa6   :  { %v41_v10 = vsub.f32 %v37_v8, %v39_v7  ;;  %v36_v11 = vmul.f32 0.03125, %v28_v9 }
  0xa7   :  { %v34_v12 = vpop.xlane.xlu1 %33 }
  0xa8   :  { %v43_v13 = vmax.f32 %v41_v10, 0.0  ;;  %v40_v14 = vmul.f32 %v36_v11, %v36_v11  ;;  %v38_v15 = vmul.f32 0.03125, %v34_v12  ;;  %v66_v35 = vsub.f32 %v24_v1, %v36_v11 }
  0xaa   :  { %94 = vrsqrt.f32 %v43_v13  ;;  %v42_v16 = vsub.f32 %v38_v15, %v40_v14  ;;  %vm47_vm0 = vcmp.eq.f32.partialorder %v43_v13, inf  ;;  %v50_v20 = vand.u32 2147483648, %v43_v13 }
  0xab   :  { %vm49_vm1 = vcmp.eq.f32.partialorder %v43_v13, 0.0 }
  0xac   :  { %v44_v17 = vmax.f32 %v42_v16, 0.0 }
  0xae   :  { %96 = vrsqrt.f32 %v44_v17  ;;  %vm54_vm2 = vcmp.eq.f32.partialorder %v44_v17, inf  ;;  %v57_v26 = vand.u32 2147483648, %v44_v17  ;;  %vm56_vm3 = vcmp.eq.f32.partialorder %v44_v17, 0.0 }
  0xb4   :  { %v95_v18 = vpop.eup %94 }
  0xb5   :  { %v46_v19 = vmul.f32 %v95_v18, %v43_v13 }
  0xb7   :  { %v48_v21 = vsel %vm47_vm0, %v43_v13, %v46_v19 }
  0xb8   :  { %v97_v22 = vpop.eup %96  ;;  %v51_v23 = vsel %vm49_vm1, %v50_v20, %v48_v21 }
  0xb9   :  { %v53_v24 = vmul.f32 %v97_v22, %v44_v17  ;;  %v59_v25 = vadd.f32 0.0001, %v51_v23 }
  0xbb   :  { %v55_v27 = vsel %vm54_vm2, %v44_v17, %v53_v24  ;;  %98 = vrcp.f32 %v59_v25 }
  0xbc   :  { %v58_v28 = vsel %vm56_vm3, %v57_v26, %v55_v27 }
  0xbd   :  { %v60_v29 = vadd.f32 0.0001, %v58_v28 }
  0xbf   :  { %100 = vrcp.f32 %v60_v29 }
  0xc5   :  { %v99_v30 = vpop.eup %98 }
  0xc6   :  { %v63_v32 = vmul.f32 1.5, %v99_v30 }
  0xc8   :  { %v67_v33 = vmul.f32 %v65_v31, %v63_v32 }
  0xc9   :  { %v101_v34 = vpop.eup %100 }
  0xca   :  { %v64_v36 = vmul.f32 1.5, %v101_v34  ;;  %v69_v37 = vadd.f32 0.1, %v67_v33 }
  0xcc   :  { %v68_v38 = vmul.f32 %v66_v35, %v64_v36  ;;  %71 = vst [vmem:[#allocation5] sm:$0xff] %v69_v37 }
  0xce   :  { %v70_v39 = vadd.f32 0.1, %v68_v38 }
  0xd0   :  { %72 = vst [vmem:[#allocation5 + $0x8] sm:$0xff] %v70_v39 }
  0xd1   :  { %135 = shalt.err (!%p132_p12)
}
  0xd2   :  { %s136_s24 = scalar_lea.hbm %s195_s1, 256 }
  0xd3   :  { %p137_p13 = scmp.ne.s32.totalorder %s195_s1, %s136_s24  ;;  %p140_p0 = scmp.lt.u32.totalorder %s136_s24, %s195_s1 }
  0xd5   :  { %p142_p1 = pnand %p140_p0, %p137_p13 }
  0xd7   :  { %145 = shalt.err (!%p142_p1)
}
  0xd8   :  { %84 = dma.vmem_to_hbm [thread:$0]  %s79_s20, 256, %s195_s1, [#allocation4], %s151_s16, %s151_s16, %s152_s17  }
  0xd9   :  { %148 = dma.done.wait [#allocation4], 256  }
  0xda   :  { %149 = vsyncadd [#allocation4], 4294967040 }
  0xdb   :  { %88 = vsyncpa [#allocation3], 1 }
  0xdc   :  { %89 = vsyncpa [#allocation4], 1 }

</bundles_post_ra>
